<compile_context>
chip_gen: v7x
topology: tpu7x:2x2x1
jax: 0.10.0
libtpu: 0.0.40
codegen_flags: <defaults>
</compile_context>

<pallas_src>
import jax
import jax.numpy as jnp
from jax import lax
from jax.experimental import pallas as pl
from jax.experimental.pallas import tpu as pltpu

_EPS = 1e-5


def _ode_kernel(z_ref, wt_ref, params_ref, o_ref):
    """BatchNorm1d(softplus(z @ wt + bias)) on one resident VMEM block.

    z_ref      : (B, D)        activations (D = width, or K*width lane-packed)
    wt_ref     : (D, D)        pre-transposed (or block-diagonal) weight
    params_ref : (3*B, D)      rows [0:B)=bias, [B:2B)=gamma, [2B:3B)=beta,
                               each already replicated across the batch sublanes
    o_ref      : (B, D)
    """
    z = z_ref[...]
    n = z.shape[0]

    # Static ref slices — no in-kernel sublane broadcast needed.
    bias = params_ref[0 * n:1 * n, :]
    gamma = params_ref[1 * n:2 * n, :]
    beta = params_ref[2 * n:3 * n, :]

    # Linear: weight already transposed (block-diag for the fused path) once
    # per solve, so this is a single clean MXU push.
    h = jnp.dot(z, wt_ref[...], preferred_element_type=jnp.float32) + bias

    # Numerically-stable softplus: max(h,0) + log1p(exp(-|h|)).
    # Matches torch.nn.functional.softplus(beta=1, threshold=20) in f32.
    a = jnp.maximum(h, 0.0) + jnp.log1p(jnp.exp(-jnp.abs(h)))

    # BatchNorm1d over the batch axis (biased variance, eps=1e-5, affine).
    # Two independent reductions overlap on the XLU; var = E[a^2] - mean^2.
    inv_n = 1.0 / n
    mean = jnp.sum(a, axis=0, keepdims=True) * inv_n
    mean_sq = jnp.sum(a * a, axis=0, keepdims=True) * inv_n
    var = mean_sq - mean * mean

    o_ref[...] = ((a - mean) * lax.rsqrt(var + _EPS) * gamma + beta).astype(o_ref.dtype)


# ---------------------------------------------------------------------------
# Once-per-solve parameter packing (hoisted out of the per-call jitted path).
# ---------------------------------------------------------------------------

def prepare_single_params(weight, bias, gamma, beta, batch):
    """Constants for the single-eval path (called once per ODE solve)."""
    wt = weight.T                                          # (W, W): h = z @ wt
    p = jnp.stack([bias, gamma, beta], axis=0)             # (3, W)
    params = jnp.repeat(p, batch, axis=0)                  # (3*B, W), sublane-replicated
    return wt, params


def prepare_fused_params(weight, bias, gamma, beta, batch, k):
    """Constants for the K-eval lane-packed path (called once per ODE solve)."""
    wt = weight.T
    # Block-diagonal W^T: lane slice [k*W:(k+1)*W] of the packed state sees its
    # own copy of the linear layer.  64 KB at K*W = 128 — built once per solve.
    wt_blk = jnp.kron(jnp.eye(k, dtype=wt.dtype), wt)      # (K*W, K*W)
    p = jnp.stack([bias, gamma, beta], axis=0)             # (3, W)
    p_tiled = jnp.tile(p, (1, k))                          # (3, K*W): per-eval lane slice
    params = jnp.repeat(p_tiled, batch, axis=0)            # (3*B, K*W)
    return wt_blk, params


# ---------------------------------------------------------------------------
# Forward entry points (single grid-free block, everything resident in VMEM).
# ---------------------------------------------------------------------------

@jax.jit
def ode_linear_forward(t, z, wt, params):
    """Pallas implementation of _ODELinear.forward(t, z) (single evaluation).

    t is ignored (kept to mirror the ODE-func signature).
    z: (B, W) f32; wt: (W, W) = weight.T (precomputed once per solve);
    params: (3*B, W) pre-replicated [bias; gamma; beta].
    """
    del t
    batch, width = z.shape
    vmem = pl.BlockSpec(memory_space=pltpu.MemorySpace.VMEM)
    return pl.pallas_call(
        _ode_kernel,
        out_shape=jax.ShapeDtypeStruct((batch, width), z.dtype),
        in_specs=[vmem, vmem, vmem],   # full arrays resident in VMEM, no grid
        out_specs=vmem,
    )(z, wt, params)


def ode_linear_forward_fused(t, z_packed, wt_blockdiag, params_packed):
    """K independent RHS evaluations fused into ONE grid-free pallas_call.

    Evals are lane-packed: z_packed is (B, K*W) with eval k living in lane
    slice [k*W:(k+1)*W]; wt_blockdiag is the (K*W, K*W) block-diagonal W^T and
    params_packed the lane-tiled, sublane-replicated (3*B, K*W) affine params
    (both built once per solve by prepare_fused_params).  The math is then
    *identical* to the single-eval kernel at a lane-dense (8, 128) layout —
    one MXU push with M=B, unmasked 128-lane stores, zero per-eval grid steps.
    """
    return ode_linear_forward(t, z_packed, wt_blockdiag, params_packed)


if __name__ == "__main__":
    batch, width, k_evals = 8, 32, 4
    key = jax.random.PRNGKey(0)
    k_z, k_w, k_b, k_g, k_be = jax.random.split(key, 5)

    bound = 1.0 / (width ** 0.5)
    zs = jax.random.normal(k_z, (k_evals, batch, width), dtype=jnp.float32)
    weight = jax.random.uniform(k_w, (width, width), jnp.float32, -bound, bound)
    bias = jax.random.uniform(k_b, (width,), jnp.float32, -bound, bound)
    gamma = 1.0 + 0.1 * jax.random.normal(k_g, (width,), jnp.float32)
    beta = 0.1 * jax.random.normal(k_be, (width,), jnp.float32)
    t = jnp.float32(0.0)  # unused, mirrors the ODE signature

    # Pure-JAX reference of the same math (PyTorch-style thresholded softplus,
    # biased-variance BatchNorm with batch statistics).
    def ref_forward(z):
        h = z @ weight.T + bias
        a = jnp.where(h > 20.0, h, jnp.log1p(jnp.exp(jnp.minimum(h, 20.0))))
        m = a.mean(axis=0, keepdims=True)
        v = ((a - m) ** 2).mean(axis=0, keepdims=True)
        return (a - m) / jnp.sqrt(v + 1e-5) * gamma + beta

    # 1) Single-eval forward — matches _ODELinear.forward(t, z).
    wt, params = prepare_single_params(weight, bias, gamma, beta, batch)
    out1 = ode_linear_forward(t, zs[0], wt, params)
    jax.block_until_ready(out1)
    assert jnp.allclose(out1, ref_forward(zs[0]), atol=2e-5, rtol=2e-5)

    # 2) Fused K-eval path: lane-pack the K evals once, one grid-free call.
    wt_blk, params_blk = prepare_fused_params(weight, bias, gamma, beta, batch, k_evals)
    z_packed = jnp.transpose(zs, (1, 0, 2)).reshape(batch, k_evals * width)  # (8, 128)
    out_packed = ode_linear_forward_fused(t, z_packed, wt_blk, params_blk)
    jax.block_until_ready(out_packed)
    out_k = out_packed.reshape(batch, k_evals, width).transpose(1, 0, 2)
    ref_k = jnp.stack([ref_forward(zs[i]) for i in range(k_evals)], axis=0)
    assert jnp.allclose(out_k, ref_k, atol=2e-5, rtol=2e-5)

    print("KERNEL_OK")
</pallas_src>

<mosaic_0001>
module attributes {stable_mosaic.version = 11 : i64} {
  func.func @_ode_kernel(%arg0: memref<8x32xf32, #tpu.memory_space<vmem>>, %arg1: memref<32x32xf32, #tpu.memory_space<vmem>>, %arg2: memref<24x32xf32, #tpu.memory_space<vmem>>, %arg3: memref<8x32xf32, #tpu.memory_space<vmem>>) attributes {dimension_semantics = [], scalar_prefetch = 0 : i64, scratch_operands = 0 : i64, tpu.core_type = #tpu.core_type<tc>} {
    %c0 = arith.constant 0 : index
    %c0_0 = arith.constant 0 : index
    %0 = vector.load %arg0[%c0, %c0_0] : memref<8x32xf32, #tpu.memory_space<vmem>>, vector<8x32xf32>
    %c0_1 = arith.constant 0 : index
    %c0_2 = arith.constant 0 : index
    %1 = vector.load %arg2[%c0_1, %c0_2] : memref<24x32xf32, #tpu.memory_space<vmem>>, vector<8x32xf32>
    %c8 = arith.constant 8 : index
    %c0_3 = arith.constant 0 : index
    %2 = vector.load %arg2[%c8, %c0_3] : memref<24x32xf32, #tpu.memory_space<vmem>>, vector<8x32xf32>
    %c16 = arith.constant 16 : index
    %c0_4 = arith.constant 0 : index
    %3 = vector.load %arg2[%c16, %c0_4] : memref<24x32xf32, #tpu.memory_space<vmem>>, vector<8x32xf32>
    %c0_5 = arith.constant 0 : index
    %c0_6 = arith.constant 0 : index
    %4 = vector.load %arg1[%c0_5, %c0_6] : memref<32x32xf32, #tpu.memory_space<vmem>>, vector<32x32xf32>
    %cst = arith.constant dense<0.000000e+00> : vector<8x32xf32>
    %5 = tpu.matmul %0, %4, %cst {dimension_numbers = #tpu.dot_dimension_numbers<[1], [0], [0], [1], [0, 0, 1, 1], [], []>} : vector<8x32xf32>, vector<32x32xf32>, vector<8x32xf32> -> vector<8x32xf32>
    %6 = arith.addf %5, %1 : vector<8x32xf32>
    %cst_7 = arith.constant 0.000000e+00 : f32
    %7 = vector.broadcast %cst_7 : f32 to vector<8x32xf32>
    %8 = arith.maximumf %6, %7 : vector<8x32xf32>
    %9 = math.absf %6 : vector<8x32xf32>
    %cst_8 = arith.constant 0.000000e+00 : f32
    %10 = vector.broadcast %cst_8 : f32 to vector<8x32xf32>
    %11 = arith.subf %10, %9 : vector<8x32xf32>
    %12 = math.exp %11 : vector<8x32xf32>
    %13 = math.log1p %12 : vector<8x32xf32>
    %14 = arith.addf %8, %13 : vector<8x32xf32>
    %cst_9 = arith.constant dense<0.000000e+00> : vector<32xf32>
    %15 = vector.multi_reduction <add>, %14, %cst_9 [0] : vector<8x32xf32> to vector<32xf32>
    %16 = vector.shape_cast %15 : vector<32xf32> to vector<1x32xf32>
    %cst_10 = arith.constant 1.250000e-01 : f32
    %17 = vector.broadcast %cst_10 : f32 to vector<1x32xf32>
    %18 = arith.mulf %16, %17 : vector<1x32xf32>
    %19 = arith.mulf %14, %14 : vector<8x32xf32>
    %cst_11 = arith.constant dense<0.000000e+00> : vector<32xf32>
    %20 = vector.multi_reduction <add>, %19, %cst_11 [0] : vector<8x32xf32> to vector<32xf32>
    %21 = vector.shape_cast %20 : vector<32xf32> to vector<1x32xf32>
    %cst_12 = arith.constant 1.250000e-01 : f32
    %22 = vector.broadcast %cst_12 : f32 to vector<1x32xf32>
    %23 = arith.mulf %21, %22 : vector<1x32xf32>
    %24 = arith.mulf %18, %18 : vector<1x32xf32>
    %25 = arith.subf %23, %24 : vector<1x32xf32>
    %26 = vector.broadcast %18 : vector<1x32xf32> to vector<8x32xf32>
    %27 = arith.subf %14, %26 : vector<8x32xf32>
    %cst_13 = arith.constant 9.99999974E-6 : f32
    %28 = vector.broadcast %cst_13 : f32 to vector<1x32xf32>
    %29 = arith.addf %25, %28 : vector<1x32xf32>
    %30 = math.rsqrt %29 : vector<1x32xf32>
    %31 = vector.broadcast %30 : vector<1x32xf32> to vector<8x32xf32>
    %32 = arith.mulf %27, %31 : vector<8x32xf32>
    %33 = arith.mulf %32, %2 : vector<8x32xf32>
    %34 = arith.addf %33, %3 : vector<8x32xf32>
    %c0_14 = arith.constant 0 : index
    %c0_15 = arith.constant 0 : index
    %35 = vector.load %arg3[%c0_14, %c0_15] : memref<8x32xf32, #tpu.memory_space<vmem>>, vector<8x32xf32>
    tpu.vector_store %arg3[%c0_14, %c0_15], %34 {strides = array<i32>} : memref<8x32xf32, #tpu.memory_space<vmem>>, vector<8x32xf32>,
    return
  }
}

</mosaic_0001>

<bundles_post_ra>
// kernel: ode_linear_forward.1
= control target key start
LH: loop header
LB: loop body
LE: loop exit
PB: predicated region body
PF: predicated region fallthrough
CT: control target
= control target key end

     0   :  { %8 = vsyncpa [#allocation3], 0  ;;  %s412_s0 = inlined_call_operand.hbm [shape: f32[8,32], index: 0, kind: input, shape index: {}]   ;;  %s413_s1 = inlined_call_operand.hbm [shape: f32[32,32], index: 1, kind: input, shape index: {}]   ;;  %s414_s2 = inlined_call_operand.hbm [shape: f32[24,32], index: 2, kind: input, shape index: {}]   ;;  %s415_s3 = inlined_call_operand.hbm [shape: f32[8,32], index: 3, kind: output, shape index: {}]  }
   0x1   :  { %9 = vsyncpa [#allocation6], 0 }
   0x2   :  { %10 = vsyncpa [#allocation4], 0  ;;  %s325_s12 = smov [#allocation5]   ;;  %s231_s16 = scalar_lea.hbm %s413_s1, 512 }
   0x3   :  { %s26_s13 = sshll.u32 %s325_s12, 4  ;;  %p232_p0 = scmp.ne.s32.totalorder %s413_s1, %s231_s16  ;;  %s27_s13 = int_to_ptr.vmem [resolvable:$true] %s26_s13 }
   0x4   :  { %p235_p1 = scmp.lt.u32.totalorder %s231_s16, %s413_s1 }
   0x6   :  { %p237_p2 = pnand %p235_p1, %p232_p0 }
   0x8   :  { %240 = shalt.err (!%p237_p2)
}
   0x9   :  { %s241_s21 = scalar_lea.vmem %s27_s13, 512  ;;  %p246_p4 = scmp.lt.s32.totalorder %s27_s13, %s27_s13 }
   0xa   :  { %p242_p3 = scmp.ne.s32.totalorder %s27_s13, %s241_s21  ;;  %p247_p5 = scmp.lt.s32.totalorder %s241_s21, %s241_s21 }
   0xc   :  { %p248_p6 = por %p247_p5, %p246_p4 }
   0xe   :  { %p249_p7 = pnand %p248_p6, %p242_p3 }
  0x10   :  { %252 = shalt.err (!%p249_p7)
}
  0x11   :  { %s326_s22 = smov 128   ;;  %s327_s23 = smov 8  }
  0x12   :  { %32 = dma.hbm_to_vmem [thread:$0]  %s413_s1, 512, %s27_s13, [#allocation6], %s326_s22, %s326_s22, %s327_s23  }
  0x13   :  { %s328_s26 = smov [#allocation2]   ;;  %s329_s28 = smov [#allocation7]  }
  0x14   :  { %s17_s27 = sshll.u32 %s328_s26, 4  ;;  %s38_s29 = sshll.u32 %s329_s28, 4  ;;  %s18_s27 = int_to_ptr.vmem [resolvable:$true] %s17_s27  ;;  %s39_s29 = int_to_ptr.vmem [resolvable:$true] %s38_s29 }
  0x15   :  { %s253_s5 = scalar_lea.hbm %s412_s0, 128 }
  0x16   :  { %p254_p8 = scmp.ne.s32.totalorder %s412_s0, %s253_s5  ;;  %p257_p9 = scmp.lt.u32.totalorder %s253_s5, %s412_s0 }
  0x18   :  { %p259_p10 = pnand %p257_p9, %p254_p8 }
  0x1a   :  { %262 = shalt.err (!%p259_p10)
}
  0x1b   :  { %s263_s1 = scalar_lea.vmem %s18_s27, 128  ;;  %p268_p12 = scmp.lt.s32.totalorder %s18_s27, %s18_s27 }
  0x1c   :  { %p264_p11 = scmp.ne.s32.totalorder %s18_s27, %s263_s1  ;;  %p269_p13 = scmp.lt.s32.totalorder %s263_s1, %s263_s1 }
  0x1e   :  { %p270_p0 = por %p269_p13, %p268_p12 }
  0x20   :  { %p271_p1 = pnand %p270_p0, %p264_p11 }
  0x22   :  { %274 = shalt.err (!%p271_p1)
}
  0x23   :  { %20 = dma.hbm_to_vmem [thread:$0]  %s412_s0, 128, %s18_s27, [#allocation3]  }
  0x24   :  { %s275_s14 = scalar_lea.hbm %s414_s2, 384 }
  0x25   :  { %p276_p2 = scmp.ne.s32.totalorder %s414_s2, %s275_s14  ;;  %p279_p3 = scmp.lt.u32.totalorder %s275_s14, %s414_s2 }
  0x27   :  { %p281_p4 = pnand %p279_p3, %p276_p2 }
  0x29   :  { %284 = shalt.err (!%p281_p4)
}
  0x2a   :  { %s285_s19 = scalar_lea.vmem %s39_s29, 384  ;;  %p290_p6 = scmp.lt.s32.totalorder %s39_s29, %s39_s29 }
  0x2b   :  { %p286_p5 = scmp.ne.s32.totalorder %s39_s29, %s285_s19  ;;  %p291_p7 = scmp.lt.s32.totalorder %s285_s19, %s285_s19 }
  0x2d   :  { %p292_p8 = por %p291_p7, %p290_p6 }
  0x2f   :  { %p293_p9 = pnand %p292_p8, %p286_p5 }
  0x31   :  { %296 = shalt.err (!%p293_p9)
}
  0x32   :  { %44 = dma.hbm_to_vmem [thread:$0]  %s414_s2, 384, %s39_s29, [#allocation6], %s326_s22, %s326_s22, %s327_s23  }
  0x33   :  { %319 = dma.done.wait [#allocation3], 128  }
  0x34   :  { %320 = vsyncadd [#allocation3], 4294967168 }
  0x35   :  { %321 = dma.done.wait [#allocation6], 896  }
  0x36   :  { %322 = vsyncadd [#allocation6], 4294966400  ;;  %v330_v0 = vmov 0.0|0.0   ;;  %vm331_vm0 = vmmov 0   ;;  %v332_v1 = vmov 0.0   ;;  %v58_v2 = vld [vmem:[#allocation5] sm:$0xff] }
  0x37   :  { %210 = vmatprep.subr.bf16.mxu0 %v330_v0  ;;  %207 = vmatprep.mubr.msk.f32.mxu0 %vm331_vm0, %v332_v1  ;;  %v59_v3 = vld [vmem:[#allocation5 + $0x8] sm:$0xff]  ;;  %v60_v4 = vld [vmem:[#allocation5 + $0x10] sm:$0xff]  ;;  %v61_v6 = vld [vmem:[#allocation5 + $0x18] sm:$0xff]  ;;  %vm62_vm1 = vcmask 261120   ;;  %s333_s2 = smov [#allocation8]  }
  0x38   :  { %v211_v5 = vpack.c.bf16 %v59_v3, %v58_v2  ;;  %v214_v7 = vpack.c.bf16 %v61_v6, %v60_v4  ;;  %v54_v8 = vld [vmem:[#allocation2] sm:$0xff]  ;;  %v55_v9 = vld [vmem:[#allocation7] sm:$0xff]  ;;  %v56_v49 = vld [vmem:[#allocation7 + $0x8] sm:$0xff]  ;;  %s183_s21 = sshll.u32 %s333_s2, 4  ;;  %s184_s21 = int_to_ptr.vmem [resolvable:$true] %s183_s21 }
  0x39   :  { %v57_v51 = vld [vmem:[#allocation7 + $0x10] sm:$0xff]  ;;  %s297_s22 = scalar_lea.vmem %s184_s21, 128  ;;  %p302_p11 = scmp.lt.s32.totalorder %s184_s21, %s184_s21 }
  0x3a   :  { %212 = vmatpush3.bf16.msra.mxu0 %v211_v5  ;;  %p298_p10 = scmp.ne.s32.totalorder %s184_s21, %s297_s22  ;;  %p303_p12 = scmp.lt.s32.totalorder %s297_s22, %s297_s22 }
  0x3b   :  { %213 = vmatprep.subr.bf16.mxu0 %v330_v0 }
  0x3c   :  { %p304_p13 = por %p303_p12, %p302_p11 }
  0x3e   :  { %215 = vmatpush3.bf16.msra.mxu0 %v214_v7  ;;  %p305_p0 = pnand %p304_p13, %p298_p10 }
  0x41   :  { %208 = vmatmul.mubr.msk.f32.vlgmr.msra.gmra.mrb[0].mxu0 %vm62_vm1, %v54_v8 }
 0x114   :  { %v132_v10 = vpop.f32.mrb[0].mxu0 }
 0x115   :  { %v133_v11 = vadd.f32 %v132_v10, %v55_v9  ;;  %v209_v12 = vpop.f32.mrb[1].mxu0 }
 0x117   :  { %v137_v13 = vand.u32 2147483647, %v133_v11  ;;  %v136_v24 = vmax.f32 %v133_v11, 0.0 }
 0x119   :  { %v138_v14 = vsub.f32 0.0, %v137_v13 }
 0x11b   :  { %v139_v15 = vmul.f32 1.442695, %v138_v14 }
 0x11d   :  { %225 = vpow2.f32 %v139_v15 }
 0x127   :  { %v226_v16 = vpop.eup %225 }
 0x128   :  { %v141_v17 = vadd.f32 1.0, %v226_v16  ;;  %v144_v18 = vmul.f32 -0.5, %v226_v16  ;;  %v147_v20 = vand.u32 2147483647, %v226_v16 }
 0x12a   :  { %227 = vlog2.f32 %v141_v17  ;;  %v145_v19 = vadd.f32 1.0, %v144_v18  ;;  %vm148_vm2 = vcmp.lt.f32.partialorder %v147_v20, 0.0004427343 }
 0x12c   :  { %v146_v23 = vmul.f32 %v226_v16, %v145_v19 }
 0x134   :  { %v228_v21 = vpop.eup %227 }
 0x135   :  { %v143_v22 = vmul.f32 0.6931472, %v228_v21 }
 0x137   :  { %v149_v25 = vsel %vm148_vm2, %v146_v23, %v143_v22 }
 0x138   :  { %v150_v26 = vadd.f32 %v149_v25, %v136_v24 }
 0x13a   :  { %v151_v27 = vsel %vm62_vm1, %v150_v26, 0.0  ;;  %v159_v28 = vmul.f32 %v150_v26, %v150_v26 }
 0x13b   :  { %v152_v29 = vrot.slane %v151_v27, 4 }
 0x13c   :  { %v160_v30 = vsel %vm62_vm1, %v159_v28, 0.0 }
 0x13d   :  { %v153_v31 = vadd.f32 %v152_v29, %v151_v27  ;;  %v161_v32 = vrot.slane %v160_v30, 4 }
 0x13f   :  { %v154_v33 = vrot.slane %v153_v31, 2  ;;  %v162_v34 = vadd.f32 %v161_v32, %v160_v30 }
 0x141   :  { %v155_v35 = vadd.f32 %v154_v33, %v153_v31  ;;  %v163_v36 = vrot.slane %v162_v34, 2 }
 0x143   :  { %v156_v37 = vrot.slane %v155_v35, 1  ;;  %v164_v38 = vadd.f32 %v163_v36, %v162_v34 }
 0x145   :  { %v157_v39 = vadd.f32 %v156_v37, %v155_v35  ;;  %v165_v40 = vrot.slane %v164_v38, 1 }
 0x147   :  { %v158_v41 = vmul.f32 0.125, %v157_v39  ;;  %v166_v42 = vadd.f32 %v165_v40, %v164_v38 }
 0x149   :  { %v167_v43 = vmul.f32 0.125, %v166_v42  ;;  %v168_v44 = vmul.f32 %v158_v41, %v158_v41  ;;  %v170_v47 = vsub.f32 %v150_v26, %v158_v41 }
 0x14b   :  { %v169_v45 = vsub.f32 %v167_v43, %v168_v44 }
 0x14d   :  { %v171_v46 = vadd.f32 1e-05, %v169_v45 }
 0x14f   :  { %229 = vrsqrt.f32 %v171_v46 }
 0x159   :  { %v230_v48 = vpop.eup %229 }
 0x15a   :  { %v173_v50 = vmul.f32 %v230_v48, %v170_v47 }
 0x15c   :  { %v174_v52 = vmul.f32 %v173_v50, %v56_v49 }
 0x15e   :  { %v175_v53 = vadd.f32 %v174_v52, %v57_v51 }
 0x160   :  { %176 = vst.msk [vmem:[#allocation8] sm:$0xff] %vm62_vm1, %v175_v53 }
 0x161   :  { %308 = shalt.err (!%p305_p0)
}
 0x162   :  { %s309_s25 = scalar_lea.hbm %s415_s3, 128 }
 0x163   :  { %p310_p1 = scmp.ne.s32.totalorder %s415_s3, %s309_s25  ;;  %p313_p2 = scmp.lt.u32.totalorder %s309_s25, %s415_s3 }
 0x165   :  { %p315_p3 = pnand %p313_p2, %p310_p1 }
 0x167   :  { %318 = shalt.err (!%p315_p3)
}
 0x168   :  { %186 = dma.vmem_to_hbm [thread:$0]  %s184_s21, 128, %s415_s3, [#allocation4]  }
 0x169   :  { %323 = dma.done.wait [#allocation4], 128  }
 0x16a   :  { %324 = vsyncadd [#allocation4], 4294967168 }
 0x16b   :  { %190 = vsyncpa [#allocation3], 1 }
 0x16c   :  { %191 = vsyncpa [#allocation6], 1 }
 0x16d   :  { %192 = vsyncpa [#allocation4], 1 }

</bundles_post_ra>
